<compile_context>
chip_gen: v7x
topology: tpu7x:2x2x1
jax: 0.10.0
libtpu: 0.0.40
codegen_flags: <defaults>
</compile_context>

<pallas_src>
from functools import partial

import numpy as np

import jax
import jax.numpy as jnp
from jax import lax
from jax.experimental import pallas as pl
from jax.experimental.pallas import tpu as pltpu


def _rup(x, m):
    return ((x + m - 1) // m) * m


# ----------------------------------------------------------------------------
# Static slab layout (pure Python, shared by packer and kernel).
# ----------------------------------------------------------------------------
def make_layout(image_dim, hidden_dim, num_classes):
    H, C = hidden_dim, num_classes
    assert C + 1 <= 128 and 3 * H <= 128

    wlay, wrow = {}, 0

    def add_w(name, in_f, out_f):
        nonlocal wrow
        wlay[name] = (wrow, in_f, out_f)
        wrow += _rup(in_f, 16)            # 16-row alignment for the bf16 tile

    # image encoder (third Linear is folded into l0's input projection)
    add_w('we1', image_dim, 128)
    add_w('we2', 128, 32)
    # local GRU layer 0 (gates fused along lanes: r|z|n)
    add_w('l0_wih_img', 32, 3 * H)        # = we3 @ W_ih[:8]  (folded encoder layer)
    add_w('l0_wih_pos', 12, 3 * H)
    add_w('l0_whh', H, 3 * H)
    # local GRU layer 1
    add_w('l1_wih', H, 3 * H)
    add_w('l1_whh', H, 3 * H)
    # global GRU layers (hidden state is always zero -> no W_hh packed)
    add_w('g0_wih', H, 3 * H)
    add_w('g1_wih', H, 3 * H)
    # fused local decoders (distance | class)
    add_w('wloc1_f', H, 64)
    add_w('wloc1_q', 4, 64)
    add_w('wloc2', 64, 128)
    # global decoder
    add_w('wg1_f', H, 32)
    add_w('wg1_q', 12, 32)
    add_w('wg2p', 32, 128)
    w_rows = _rup(wrow, 16)

    blay, brow = {}, 0

    def add_b(name, width):
        nonlocal brow
        blay[name] = (brow, width)
        brow += 1

    add_b('be1', 128)
    add_b('be2', 32)
    for lyr in ('l0', 'l1', 'g0', 'g1'):
        add_b(f'{lyr}_brzn', 3 * H)       # [b_ir+b_hr | b_iz+b_hz | b_in] (+ be3 fold for l0)
        add_b(f'{lyr}_bhn', H)
    add_b('b_loc1', 64)
    add_b('b_loc2', 128)
    add_b('bg1', 32)
    add_b('bg2p', 128)
    b_rows = _rup(brow, 8)

    # packed data-input lane segments (each starts at a 128-aligned lane offset)
    seg, off = {}, 0

    def add_seg(name, width):
        nonlocal off
        pw = _rup(width, 128)
        seg[name] = (off, width, pw)
        off += pw

    add_seg('image', image_dim)
    add_seg('agent_pos', 12)
    add_seg('global_query', 12)
    add_seg('h_l0', H)
    add_seg('h_l1', H)
    xb_w = off

    return dict(H=H, C=C, image_dim=image_dim, w_rows=w_rows, b_rows=b_rows,
                wlay=wlay, blay=blay, seg=seg, xb_w=xb_w)


# ----------------------------------------------------------------------------
# Parameter init (PyTorch-style uniform bounds).  Returns the packed slabs
# (bf16 weights, f32 biases) plus the raw unfused parameters for the reference.
# ----------------------------------------------------------------------------
def init_packed_params(key, layout):
    H, C = layout['H'], layout['C']
    image_dim = layout['image_dim']
    wlay, blay = layout['wlay'], layout['blay']

    wslab = np.zeros((layout['w_rows'], 128), np.float32)
    bslab = np.zeros((layout['b_rows'], 128), np.float32)
    raw = {}

    keys = iter(jax.random.split(key, 128))

    def U(shape, bnd):
        return np.asarray(jax.random.uniform(next(keys), shape, jnp.float32, -bnd, bnd))

    def put_w(name, arr):
        off, in_f, out_f = wlay[name]
        assert arr.shape == (in_f, out_f), (name, arr.shape)
        wslab[off:off + in_f, :out_f] = arr

    def put_b(name, arr):
        r, w = blay[name]
        assert arr.shape == (w,), (name, arr.shape)
        bslab[r, :w] = arr

    # image encoder (nn.Linear: U(+-1/sqrt(fan_in)) for W and b), stored [in, out]
    def lin(in_f, out_f):
        bnd = 1.0 / np.sqrt(in_f)
        return U((in_f, out_f), bnd), U((out_f,), bnd)

    we1, be1 = lin(image_dim, 128)
    we2, be2 = lin(128, 32)
    we3, be3 = lin(32, 8)
    raw.update(we1=we1, be1=be1, we2=we2, be2=be2, we3=we3, be3=be3)
    put_w('we1', we1); put_b('be1', be1)
    put_w('we2', we2); put_b('be2', be2)

    # GRU layers: all params U(+-1/sqrt(H))
    gbnd = 1.0 / np.sqrt(H)
    gates = ('r', 'z', 'n')

    def gru_raw(pfx, in_f):
        p = {}
        for g in gates:
            p[f'wih_{g}'] = U((in_f, H), gbnd)
            p[f'whh_{g}'] = U((H, H), gbnd)
            p[f'bih_{g}'] = U((H,), gbnd)
            p[f'bhh_{g}'] = U((H,), gbnd)
        for k, v in p.items():
            raw[f'{pfx}_{k}'] = v
        return p

    # TODO(synk): the PyTorch __init__ declares local GRU input_size = 8+12+4 = 24,
    # but forward() feeds cat(image_feature[8], agent_pos[12]) = 20 features (which
    # would raise in PyTorch); the GRU is sized to the actually-fed 20 features.
    p0 = gru_raw('l0', 20)
    w_img = np.concatenate([we3 @ p0[f'wih_{g}'][0:8] for g in gates], axis=1)   # [32, 3H]
    w_pos = np.concatenate([p0[f'wih_{g}'][8:20] for g in gates], axis=1)        # [12, 3H]
    w_hh0 = np.concatenate([p0[f'whh_{g}'] for g in gates], axis=1)              # [H, 3H]
    brzn0 = np.concatenate([
        p0['bih_r'] + p0['bhh_r'] + be3 @ p0['wih_r'][0:8],
        p0['bih_z'] + p0['bhh_z'] + be3 @ p0['wih_z'][0:8],
        p0['bih_n'] + be3 @ p0['wih_n'][0:8]])
    put_w('l0_wih_img', w_img); put_w('l0_wih_pos', w_pos); put_w('l0_whh', w_hh0)
    put_b('l0_brzn', brzn0); put_b('l0_bhn', p0['bhh_n'])

    def pack_gru(pfx, p, with_hh):
        put_w(f'{pfx}_wih', np.concatenate([p[f'wih_{g}'] for g in gates], axis=1))
        if with_hh:
            put_w(f'{pfx}_whh', np.concatenate([p[f'whh_{g}'] for g in gates], axis=1))
        put_b(f'{pfx}_brzn', np.concatenate([p['bih_r'] + p['bhh_r'],
                                             p['bih_z'] + p['bhh_z'],
                                             p['bih_n']]))
        put_b(f'{pfx}_bhn', p['bhh_n'])

    pack_gru('l1', gru_raw('l1', H), with_hh=True)
    pack_gru('g0', gru_raw('g0', H), with_hh=False)   # zero hidden -> no W_hh
    pack_gru('g1', gru_raw('g1', H), with_hh=False)

    # decoders
    bnd1 = 1.0 / np.sqrt(H + 4)
    wd1, bd1 = U((H + 4, 32), bnd1), U((32,), bnd1)
    wc1, bc1 = U((H + 4, 32), bnd1), U((32,), bnd1)
    bnd2 = 1.0 / np.sqrt(32)
    wd2, bd2 = U((32, 1), bnd2), U((1,), bnd2)
    wc2, bc2 = U((32, C), bnd2), U((C,), bnd2)
    bndg = 1.0 / np.sqrt(H + 12)
    wg1, bg1 = U((H + 12, 32), bndg), U((32,), bndg)
    wg2, bg2 = U((32, 1), bnd2), U((1,), bnd2)
    raw.update(wd1=wd1, bd1=bd1, wd2=wd2, bd2=bd2, wc1=wc1, bc1=bc1, wc2=wc2,
               bc2=bc2, wg1=wg1, bg1=bg1, wg2=wg2, bg2=bg2)

    put_w('wloc1_f', np.concatenate([wd1[0:H], wc1[0:H]], axis=1))
    put_w('wloc1_q', np.concatenate([wd1[H:H + 4], wc1[H:H + 4]], axis=1))
    put_b('b_loc1', np.concatenate([bd1, bc1]))
    wloc2 = np.zeros((64, 128), np.float32)
    wloc2[0:32, 0:1] = wd2
    wloc2[32:64, 1:1 + C] = wc2
    put_w('wloc2', wloc2)
    b_loc2 = np.zeros((128,), np.float32)
    b_loc2[0] = bd2[0]
    b_loc2[1:1 + C] = bc2
    put_b('b_loc2', b_loc2)

    put_w('wg1_f', wg1[0:H]); put_w('wg1_q', wg1[H:H + 12]); put_b('bg1', bg1)
    wg2p = np.zeros((32, 128), np.float32)
    wg2p[:, 0:1] = wg2
    put_w('wg2p', wg2p)
    bg2p = np.zeros((128,), np.float32)
    bg2p[0] = bg2[0]
    put_b('bg2p', bg2p)

    raw = {k: jnp.asarray(v) for k, v in raw.items()}
    return jnp.asarray(wslab, jnp.bfloat16), jnp.asarray(bslab), raw


# ----------------------------------------------------------------------------
# The kernel.
# ----------------------------------------------------------------------------
def zsla_kernel(xb_ref, lq_ref, wslab_ref, bslab_ref,
                out_local_ref, out_misc_ref, *, layout, B, Q):
    H = layout['H']
    wlay, blay, seg = layout['wlay'], layout['blay'], layout['seg']
    relu, sigmoid = jax.nn.relu, jax.nn.sigmoid

    def W(name):
        off, in_f, out_f = wlay[name]
        return wslab_ref[off:off + in_f, 0:out_f]

    def Bv(name):
        r, w = blay[name]
        return bslab_ref[r:r + 1, 0:w]

    def bdot(x, wname):
        # MXU-native bf16 x bf16 -> f32 accumulate (matches default f32 precision).
        return jnp.dot(x.astype(jnp.bfloat16), W(wname),
                       preferred_element_type=jnp.float32)

    def xseg(name):
        o, w, _ = seg[name]
        return xb_ref[:, o:o + w]

    image = xseg('image')
    agent_pos = xseg('agent_pos')
    gq = xseg('global_query')
    h_l0 = xseg('h_l0')
    h_l1 = xseg('h_l1')

    # ---- image encoder (third Linear folded into the l0 input projection) ----
    f = relu(bdot(image, 'we1') + Bv('be1'))
    f = relu(bdot(f, 'we2') + Bv('be2'))                          # [B, 32]

    # ---- GRU cells: one fused [*, 3H] matmul per operand ----
    def gru_local(xg, h, p):
        hg = bdot(h, f'{p}_whh')                                  # [B, 3H]
        pre = xg + Bv(f'{p}_brzn')                                # [B, 3H]
        rz = sigmoid(pre[:, 0:2 * H] + hg[:, 0:2 * H])            # r|z in one pass
        r, z = rz[:, 0:H], rz[:, H:2 * H]
        n = jnp.tanh(pre[:, 2 * H:3 * H] + r * (hg[:, 2 * H:3 * H] + Bv(f'{p}_bhn')))
        return (1.0 - z) * n + z * h

    def gru_zero_hidden(xg, p):
        # hidden state is identically zero: no W_hh matmul, no z*h term.
        pre = xg + Bv(f'{p}_brzn')
        rz = sigmoid(pre[:, 0:2 * H])
        r, z = rz[:, 0:H], rz[:, H:2 * H]
        n = jnp.tanh(pre[:, 2 * H:3 * H] + r * Bv(f'{p}_bhn'))
        return (1.0 - z) * n

    xg0 = bdot(f, 'l0_wih_img') + bdot(agent_pos, 'l0_wih_pos')
    nh_l0 = gru_local(xg0, h_l0, 'l0')
    nh_l1 = gru_local(bdot(nh_l0, 'l1_wih'), h_l1, 'l1')
    local_feature = nh_l1

    nh_g0 = gru_zero_hidden(bdot(local_feature, 'g0_wih'), 'g0')
    nh_g1 = gru_zero_hidden(bdot(nh_g0, 'g1_wih'), 'g1')
    global_feature = nh_g1

    # ---- fused local decoders (distance | class) ----
    feat_dec = bdot(local_feature, 'wloc1_f')                     # [B, 64]
    feat_rep = jnp.broadcast_to(feat_dec.reshape(B, 1, 64),
                                (B, Q, 64)).reshape(B * Q, 64)    # sublane broadcast
    h_loc = relu(feat_rep + bdot(lq_ref[...], 'wloc1_q') + Bv('b_loc1'))
    out_loc = bdot(h_loc, 'wloc2') + Bv('b_loc2')                 # [B*Q, 128] lane-dense
    col = lax.broadcasted_iota(jnp.int32, out_loc.shape, 1)
    # distance head (col 0) has a trailing ReLU; class logits (cols 1:1+C) do not
    out_local_ref[...] = jnp.where(col == 0, relu(out_loc), out_loc)

    # ---- global decoder ----
    hg2 = relu(bdot(global_feature, 'wg1_f') + bdot(gq, 'wg1_q') + Bv('bg1'))
    ge_full = sigmoid(bdot(hg2, 'wg2p') + Bv('bg2p'))             # [B, 128], col 0 = exprate

    # ---- lane-aligned slice stores (no lane concat in the epilogue) ----
    out_misc_ref[:, 0:H] = nh_l0
    out_misc_ref[:, 128:128 + H] = nh_l1
    out_misc_ref[:, 256:256 + H] = nh_g0
    out_misc_ref[:, 384:384 + H] = nh_g1
    out_misc_ref[:, 512:640] = ge_full


# ----------------------------------------------------------------------------
# Wrapper.
# ----------------------------------------------------------------------------
def zsla_forward(wslab, bslab, image, agent_pos, local_query, global_query,
                 h_local=None, h_global=None, *, layout):
    H, C = layout['H'], layout['C']
    B = image.shape[0]
    Q = local_query.shape[1]
    if h_local is None:
        h_local = jnp.zeros((2, B, H), jnp.float32)
    # h_global accepted but unused: the PyTorch forward always calls the global
    # encoder with a fresh zero hidden state.
    del h_global

    seg = layout['seg']
    pieces = []
    for name, arr in (('image', image), ('agent_pos', agent_pos),
                      ('global_query', global_query),
                      ('h_l0', h_local[0]), ('h_l1', h_local[1])):
        _, _, pw = seg[name]
        arr = arr.astype(jnp.float32)
        pieces.append(jnp.pad(arr, ((0, 0), (0, pw - arr.shape[1]))))
    xb = jnp.concatenate(pieces, axis=1)                           # [B, xb_w]
    lq = local_query.reshape(B * Q, local_query.shape[2]).astype(jnp.float32)

    vmem = pl.BlockSpec(memory_space=pltpu.MemorySpace.VMEM)
    out_shape = (jax.ShapeDtypeStruct((B * Q, 128), jnp.float32),
                 jax.ShapeDtypeStruct((B, 5 * 128), jnp.float32))

    out_local, misc = pl.pallas_call(
        partial(zsla_kernel, layout=layout, B=B, Q=Q),
        out_shape=out_shape,
        in_specs=[vmem, vmem, vmem, vmem],
        out_specs=(vmem, vmem),
    )(xb, lq, wslab, bslab)

    ld = out_local[:, 0:1].reshape(B, Q, 1)
    lc = out_local[:, 1:1 + C].reshape(B, Q, C)
    nhl = jnp.stack([misc[:, 0:H], misc[:, 128:128 + H]], axis=0)
    nhg = jnp.stack([misc[:, 256:256 + H], misc[:, 384:384 + H]], axis=0)
    ge = misc[:, 512:513]
    return ld, lc, ge, nhl, nhg


# ----------------------------------------------------------------------------
# Pure-JAX reference from the RAW (unfused) parameters, mirroring the PyTorch
# forward -- validates both the kernel and the pack-time folding/fusion.
# ----------------------------------------------------------------------------
def zsla_reference(raw, image, agent_pos, local_query, global_query, h_local):
    relu, sig = jax.nn.relu, jax.nn.sigmoid
    B, Q, _ = local_query.shape

    f = relu(image @ raw['we1'] + raw['be1'])
    f = relu(f @ raw['we2'] + raw['be2'])
    img_feat = f @ raw['we3'] + raw['be3']
    x0 = jnp.concatenate([img_feat, agent_pos], axis=1)           # [B, 20]

    def gru(x, h, p):
        r = sig(x @ raw[f'{p}_wih_r'] + raw[f'{p}_bih_r'] +
                h @ raw[f'{p}_whh_r'] + raw[f'{p}_bhh_r'])
        z = sig(x @ raw[f'{p}_wih_z'] + raw[f'{p}_bih_z'] +
                h @ raw[f'{p}_whh_z'] + raw[f'{p}_bhh_z'])
        n = jnp.tanh(x @ raw[f'{p}_wih_n'] + raw[f'{p}_bih_n'] +
                     r * (h @ raw[f'{p}_whh_n'] + raw[f'{p}_bhh_n']))
        return (1.0 - z) * n + z * h

    nh_l0 = gru(x0, h_local[0], 'l0')
    nh_l1 = gru(nh_l0, h_local[1], 'l1')
    zh = jnp.zeros_like(nh_l1)
    nh_g0 = gru(nh_l1, zh, 'g0')
    nh_g1 = gru(nh_g0, zh, 'g1')

    feat = jnp.broadcast_to(nh_l1[:, None, :], (B, Q, nh_l1.shape[1]))
    inp = jnp.concatenate([feat, local_query], axis=2)
    hd = relu(inp @ raw['wd1'] + raw['bd1'])
    ld = relu(hd @ raw['wd2'] + raw['bd2'])
    hc = relu(inp @ raw['wc1'] + raw['bc1'])
    lc = hc @ raw['wc2'] + raw['bc2']

    gin = jnp.concatenate([nh_g1, global_query], axis=1)
    hg = relu(gin @ raw['wg1'] + raw['bg1'])
    ge = sig(hg @ raw['wg2'] + raw['bg2'])
    return ld, lc, ge, jnp.stack([nh_l0, nh_l1]), jnp.stack([nh_g0, nh_g1])


if __name__ == "__main__":
    image_dim, hidden_dim, query_num, num_classes = 32, 32, 8, 2
    B = 2

    layout = make_layout(image_dim, hidden_dim, num_classes)

    key = jax.random.PRNGKey(0)
    kp, k1, k2, k3, k4, k5 = jax.random.split(key, 6)
    wslab, bslab, raw = init_packed_params(kp, layout)

    image = jax.random.normal(k1, (B, image_dim), jnp.float32)
    agent_pos = jax.random.normal(k2, (B, 12), jnp.float32)
    local_query = jax.random.normal(k3, (B, query_num, 4), jnp.float32)
    global_query = jax.random.normal(k4, (B, 12), jnp.float32)
    h_local = jax.random.normal(k5, (2, B, hidden_dim), jnp.float32)

    fwd = jax.jit(partial(zsla_forward, layout=layout))
    outs = fwd(wslab, bslab, image, agent_pos, local_query, global_query, h_local, None)
    outs = jax.block_until_ready(outs)
    ld, lc, ge, nhl, nhg = outs

    assert ld.shape == (B, query_num, 1)
    assert lc.shape == (B, query_num, num_classes)
    assert ge.shape == (B, 1)
    assert nhl.shape == (2, B, hidden_dim)
    assert nhg.shape == (2, B, hidden_dim)
    assert bool(jnp.all(jnp.isfinite(ld))) and bool(jnp.all(jnp.isfinite(lc)))
    assert bool(jnp.all(ge >= 0.0)) and bool(jnp.all(ge <= 1.0))

    refs = zsla_reference(raw, image, agent_pos, local_query, global_query, h_local)
    for got, want in zip(outs, refs):
        err = float(jnp.max(jnp.abs(got - want)))
        assert err < 5e-2, f"kernel/reference mismatch: max abs err = {err}"

    print("KERNEL_OK")
</pallas_src>

<mosaic_0001>
module attributes {stable_mosaic.version = 11 : i64} {
  func.func @zsla_kernel(%arg0: memref<2x640xf32, #tpu.memory_space<vmem>>, %arg1: memref<16x4xf32, #tpu.memory_space<vmem>>, %arg2: memref<560x128xbf16, #tpu.memory_space<vmem>>, %arg3: memref<16x128xf32, #tpu.memory_space<vmem>>, %arg4: memref<16x128xf32, #tpu.memory_space<vmem>>, %arg5: memref<2x640xf32, #tpu.memory_space<vmem>>) attributes {dimension_semantics = [], scalar_prefetch = 0 : i64, scratch_operands = 0 : i64, tpu.core_type = #tpu.core_type<tc>} {
    %c0 = arith.constant 0 : index
    %c0_0 = arith.constant 0 : index
    %0 = vector.load %arg0[%c0, %c0_0] : memref<2x640xf32, #tpu.memory_space<vmem>>, vector<2x32xf32>
    %c0_1 = arith.constant 0 : index
    %c128 = arith.constant 128 : index
    %1 = vector.load %arg0[%c0_1, %c128] : memref<2x640xf32, #tpu.memory_space<vmem>>, vector<2x12xf32>
    %c0_2 = arith.constant 0 : index
    %c256 = arith.constant 256 : index
    %2 = vector.load %arg0[%c0_2, %c256] : memref<2x640xf32, #tpu.memory_space<vmem>>, vector<2x12xf32>
    %c0_3 = arith.constant 0 : index
    %c384 = arith.constant 384 : index
    %3 = vector.load %arg0[%c0_3, %c384] : memref<2x640xf32, #tpu.memory_space<vmem>>, vector<2x32xf32>
    %c0_4 = arith.constant 0 : index
    %c512 = arith.constant 512 : index
    %4 = vector.load %arg0[%c0_4, %c512] : memref<2x640xf32, #tpu.memory_space<vmem>>, vector<2x32xf32>
    %5 = arith.truncf %0 : vector<2x32xf32> to vector<2x32xbf16>
    %c0_5 = arith.constant 0 : index
    %c0_6 = arith.constant 0 : index
    %6 = vector.load %arg2[%c0_5, %c0_6] : memref<560x128xbf16, #tpu.memory_space<vmem>>, vector<32x128xbf16>
    %cst = arith.constant dense<0.000000e+00> : vector<2x128xf32>
    %7 = tpu.matmul %5, %6, %cst {dimension_numbers = #tpu.dot_dimension_numbers<[1], [0], [0], [1], [0, 0, 1, 1], [], []>} : vector<2x32xbf16>, vector<32x128xbf16>, vector<2x128xf32> -> vector<2x128xf32>
    %c0_7 = arith.constant 0 : index
    %c0_8 = arith.constant 0 : index
    %8 = vector.load %arg3[%c0_7, %c0_8] : memref<16x128xf32, #tpu.memory_space<vmem>>, vector<1x128xf32>
    %9 = vector.broadcast %8 : vector<1x128xf32> to vector<2x128xf32>
    %10 = arith.addf %7, %9 : vector<2x128xf32>
    %cst_9 = arith.constant 0.000000e+00 : f32
    %11 = vector.broadcast %cst_9 : f32 to vector<2x128xf32>
    %12 = arith.maximumf %10, %11 : vector<2x128xf32>
    %13 = arith.truncf %12 : vector<2x128xf32> to vector<2x128xbf16>
    %c32 = arith.constant 32 : index
    %c0_10 = arith.constant 0 : index
    %14 = vector.load %arg2[%c32, %c0_10] : memref<560x128xbf16, #tpu.memory_space<vmem>>, vector<128x32xbf16>
    %cst_11 = arith.constant dense<0.000000e+00> : vector<2x32xf32>
    %15 = tpu.matmul %13, %14, %cst_11 {dimension_numbers = #tpu.dot_dimension_numbers<[1], [0], [0], [1], [0, 0, 1, 1], [], []>} : vector<2x128xbf16>, vector<128x32xbf16>, vector<2x32xf32> -> vector<2x32xf32>
    %c1 = arith.constant 1 : index
    %c0_12 = arith.constant 0 : index
    %16 = vector.load %arg3[%c1, %c0_12] : memref<16x128xf32, #tpu.memory_space<vmem>>, vector<1x32xf32>
    %17 = vector.broadcast %16 : vector<1x32xf32> to vector<2x32xf32>
    %18 = arith.addf %15, %17 : vector<2x32xf32>
    %cst_13 = arith.constant 0.000000e+00 : f32
    %19 = vector.broadcast %cst_13 : f32 to vector<2x32xf32>
    %20 = arith.maximumf %18, %19 : vector<2x32xf32>
    %21 = arith.truncf %20 : vector<2x32xf32> to vector<2x32xbf16>
    %c160 = arith.constant 160 : index
    %c0_14 = arith.constant 0 : index
    %22 = vector.load %arg2[%c160, %c0_14] : memref<560x128xbf16, #tpu.memory_space<vmem>>, vector<32x96xbf16>
    %cst_15 = arith.constant dense<0.000000e+00> : vector<2x96xf32>
    %23 = tpu.matmul %21, %22, %cst_15 {dimension_numbers = #tpu.dot_dimension_numbers<[1], [0], [0], [1], [0, 0, 1, 1], [], []>} : vector<2x32xbf16>, vector<32x96xbf16>, vector<2x96xf32> -> vector<2x96xf32>
    %24 = arith.truncf %1 : vector<2x12xf32> to vector<2x12xbf16>
    %c192 = arith.constant 192 : index
    %c0_16 = arith.constant 0 : index
    %25 = vector.load %arg2[%c192, %c0_16] : memref<560x128xbf16, #tpu.memory_space<vmem>>, vector<12x96xbf16>
    %cst_17 = arith.constant dense<0.000000e+00> : vector<2x96xf32>
    %26 = tpu.matmul %24, %25, %cst_17 {dimension_numbers = #tpu.dot_dimension_numbers<[1], [0], [0], [1], [0, 0, 1, 1], [], []>} : vector<2x12xbf16>, vector<12x96xbf16>, vector<2x96xf32> -> vector<2x96xf32>
    %27 = arith.addf %23, %26 : vector<2x96xf32>
    %28 = arith.truncf %3 : vector<2x32xf32> to vector<2x32xbf16>
    %c208 = arith.constant 208 : index
    %c0_18 = arith.constant 0 : index
    %29 = vector.load %arg2[%c208, %c0_18] : memref<560x128xbf16, #tpu.memory_space<vmem>>, vector<32x96xbf16>
    %cst_19 = arith.constant dense<0.000000e+00> : vector<2x96xf32>
    %30 = tpu.matmul %28, %29, %cst_19 {dimension_numbers = #tpu.dot_dimension_numbers<[1], [0], [0], [1], [0, 0, 1, 1], [], []>} : vector<2x32xbf16>, vector<32x96xbf16>, vector<2x96xf32> -> vector<2x96xf32>
    %c2 = arith.constant 2 : index
    %c0_20 = arith.constant 0 : index
    %31 = vector.load %arg3[%c2, %c0_20] : memref<16x128xf32, #tpu.memory_space<vmem>>, vector<1x96xf32>
    %32 = vector.broadcast %31 : vector<1x96xf32> to vector<2x96xf32>
    %33 = arith.addf %27, %32 : vector<2x96xf32>
    %34 = vector.extract_strided_slice %33 {offsets = [0, 0], sizes = [2, 64], strides = [1, 1]} : vector<2x96xf32> to vector<2x64xf32>
    %35 = vector.extract_strided_slice %30 {offsets = [0, 0], sizes = [2, 64], strides = [1, 1]} : vector<2x96xf32> to vector<2x64xf32>
    %36 = arith.addf %34, %35 : vector<2x64xf32>
    %37 = arith.negf %36 : vector<2x64xf32>
    %38 = math.exp %37 : vector<2x64xf32>
    %cst_21 = arith.constant 1.000000e+00 : f32
    %39 = vector.broadcast %cst_21 : f32 to vector<2x64xf32>
    %40 = arith.addf %39, %38 : vector<2x64xf32>
    %41 = arith.divf %39, %40 : vector<2x64xf32>
    %42 = vector.extract_strided_slice %41 {offsets = [0, 0], sizes = [2, 32], strides = [1, 1]} : vector<2x64xf32> to vector<2x32xf32>
    %43 = vector.extract_strided_slice %41 {offsets = [0, 32], sizes = [2, 32], strides = [1, 1]} : vector<2x64xf32> to vector<2x32xf32>
    %44 = vector.extract_strided_slice %33 {offsets = [0, 64], sizes = [2, 32], strides = [1, 1]} : vector<2x96xf32> to vector<2x32xf32>
    %45 = vector.extract_strided_slice %30 {offsets = [0, 64], sizes = [2, 32], strides = [1, 1]} : vector<2x96xf32> to vector<2x32xf32>
    %c3 = arith.constant 3 : index
    %c0_22 = arith.constant 0 : index
    %46 = vector.load %arg3[%c3, %c0_22] : memref<16x128xf32, #tpu.memory_space<vmem>>, vector<1x32xf32>
    %47 = vector.broadcast %46 : vector<1x32xf32> to vector<2x32xf32>
    %48 = arith.addf %45, %47 : vector<2x32xf32>
    %49 = arith.mulf %42, %48 : vector<2x32xf32>
    %50 = arith.addf %44, %49 : vector<2x32xf32>
    %51 = math.tanh %50 : vector<2x32xf32>
    %cst_23 = arith.constant 1.000000e+00 : f32
    %52 = vector.broadcast %cst_23 : f32 to vector<2x32xf32>
    %53 = arith.subf %52, %43 : vector<2x32xf32>
    %54 = arith.mulf %53, %51 : vector<2x32xf32>
    %55 = arith.mulf %43, %3 : vector<2x32xf32>
    %56 = arith.addf %54, %55 : vector<2x32xf32>
    %57 = arith.truncf %56 : vector<2x32xf32> to vector<2x32xbf16>
    %c240 = arith.constant 240 : index
    %c0_24 = arith.constant 0 : index
    %58 = vector.load %arg2[%c240, %c0_24] : memref<560x128xbf16, #tpu.memory_space<vmem>>, vector<32x96xbf16>
    %cst_25 = arith.constant dense<0.000000e+00> : vector<2x96xf32>
    %59 = tpu.matmul %57, %58, %cst_25 {dimension_numbers = #tpu.dot_dimension_numbers<[1], [0], [0], [1], [0, 0, 1, 1], [], []>} : vector<2x32xbf16>, vector<32x96xbf16>, vector<2x96xf32> -> vector<2x96xf32>
    %60 = arith.truncf %4 : vector<2x32xf32> to vector<2x32xbf16>
    %c272 = arith.constant 272 : index
    %c0_26 = arith.constant 0 : index
    %61 = vector.load %arg2[%c272, %c0_26] : memref<560x128xbf16, #tpu.memory_space<vmem>>, vector<32x96xbf16>
    %cst_27 = arith.constant dense<0.000000e+00> : vector<2x96xf32>
    %62 = tpu.matmul %60, %61, %cst_27 {dimension_numbers = #tpu.dot_dimension_numbers<[1], [0], [0], [1], [0, 0, 1, 1], [], []>} : vector<2x32xbf16>, vector<32x96xbf16>, vector<2x96xf32> -> vector<2x96xf32>
    %c4 = arith.constant 4 : index
    %c0_28 = arith.constant 0 : index
    %63 = vector.load %arg3[%c4, %c0_28] : memref<16x128xf32, #tpu.memory_space<vmem>>, vector<1x96xf32>
    %64 = vector.broadcast %63 : vector<1x96xf32> to vector<2x96xf32>
    %65 = arith.addf %59, %64 : vector<2x96xf32>
    %66 = vector.extract_strided_slice %65 {offsets = [0, 0], sizes = [2, 64], strides = [1, 1]} : vector<2x96xf32> to vector<2x64xf32>
    %67 = vector.extract_strided_slice %62 {offsets = [0, 0], sizes = [2, 64], strides = [1, 1]} : vector<2x96xf32> to vector<2x64xf32>
    %68 = arith.addf %66, %67 : vector<2x64xf32>
    %69 = arith.negf %68 : vector<2x64xf32>
    %70 = math.exp %69 : vector<2x64xf32>
    %cst_29 = arith.constant 1.000000e+00 : f32
    %71 = vector.broadcast %cst_29 : f32 to vector<2x64xf32>
    %72 = arith.addf %71, %70 : vector<2x64xf32>
    %73 = arith.divf %71, %72 : vector<2x64xf32>
    %74 = vector.extract_strided_slice %73 {offsets = [0, 0], sizes = [2, 32], strides = [1, 1]} : vector<2x64xf32> to vector<2x32xf32>
    %75 = vector.extract_strided_slice %73 {offsets = [0, 32], sizes = [2, 32], strides = [1, 1]} : vector<2x64xf32> to vector<2x32xf32>
    %76 = vector.extract_strided_slice %65 {offsets = [0, 64], sizes = [2, 32], strides = [1, 1]} : vector<2x96xf32> to vector<2x32xf32>
    %77 = vector.extract_strided_slice %62 {offsets = [0, 64], sizes = [2, 32], strides = [1, 1]} : vector<2x96xf32> to vector<2x32xf32>
    %c5 = arith.constant 5 : index
    %c0_30 = arith.constant 0 : index
    %78 = vector.load %arg3[%c5, %c0_30] : memref<16x128xf32, #tpu.memory_space<vmem>>, vector<1x32xf32>
    %79 = vector.broadcast %78 : vector<1x32xf32> to vector<2x32xf32>
    %80 = arith.addf %77, %79 : vector<2x32xf32>
    %81 = arith.mulf %74, %80 : vector<2x32xf32>
    %82 = arith.addf %76, %81 : vector<2x32xf32>
    %83 = math.tanh %82 : vector<2x32xf32>
    %cst_31 = arith.constant 1.000000e+00 : f32
    %84 = vector.broadcast %cst_31 : f32 to vector<2x32xf32>
    %85 = arith.subf %84, %75 : vector<2x32xf32>
    %86 = arith.mulf %85, %83 : vector<2x32xf32>
    %87 = arith.mulf %75, %4 : vector<2x32xf32>
    %88 = arith.addf %86, %87 : vector<2x32xf32>
    %89 = arith.truncf %88 : vector<2x32xf32> to vector<2x32xbf16>
    %c304 = arith.constant 304 : index
    %c0_32 = arith.constant 0 : index
    %90 = vector.load %arg2[%c304, %c0_32] : memref<560x128xbf16, #tpu.memory_space<vmem>>, vector<32x96xbf16>
    %cst_33 = arith.constant dense<0.000000e+00> : vector<2x96xf32>
    %91 = tpu.matmul %89, %90, %cst_33 {dimension_numbers = #tpu.dot_dimension_numbers<[1], [0], [0], [1], [0, 0, 1, 1], [], []>} : vector<2x32xbf16>, vector<32x96xbf16>, vector<2x96xf32> -> vector<2x96xf32>
    %c6 = arith.constant 6 : index
    %c0_34 = arith.constant 0 : index
    %92 = vector.load %arg3[%c6, %c0_34] : memref<16x128xf32, #tpu.memory_space<vmem>>, vector<1x96xf32>
    %93 = vector.broadcast %92 : vector<1x96xf32> to vector<2x96xf32>
    %94 = arith.addf %91, %93 : vector<2x96xf32>
    %95 = vector.extract_strided_slice %94 {offsets = [0, 0], sizes = [2, 64], strides = [1, 1]} : vector<2x96xf32> to vector<2x64xf32>
    %96 = arith.negf %95 : vector<2x64xf32>
    %97 = math.exp %96 : vector<2x64xf32>
    %cst_35 = arith.constant 1.000000e+00 : f32
    %98 = vector.broadcast %cst_35 : f32 to vector<2x64xf32>
    %99 = arith.addf %98, %97 : vector<2x64xf32>
    %100 = arith.divf %98, %99 : vector<2x64xf32>
    %101 = vector.extract_strided_slice %100 {offsets = [0, 0], sizes = [2, 32], strides = [1, 1]} : vector<2x64xf32> to vector<2x32xf32>
    %102 = vector.extract_strided_slice %100 {offsets = [0, 32], sizes = [2, 32], strides = [1, 1]} : vector<2x64xf32> to vector<2x32xf32>
    %103 = vector.extract_strided_slice %94 {offsets = [0, 64], sizes = [2, 32], strides = [1, 1]} : vector<2x96xf32> to vector<2x32xf32>
    %c7 = arith.constant 7 : index
    %c0_36 = arith.constant 0 : index
    %104 = vector.load %arg3[%c7, %c0_36] : memref<16x128xf32, #tpu.memory_space<vmem>>, vector<1x32xf32>
    %105 = vector.broadcast %104 : vector<1x32xf32> to vector<2x32xf32>
    %106 = arith.mulf %101, %105 : vector<2x32xf32>
    %107 = arith.addf %103, %106 : vector<2x32xf32>
    %108 = math.tanh %107 : vector<2x32xf32>
    %cst_37 = arith.constant 1.000000e+00 : f32
    %109 = vector.broadcast %cst_37 : f32 to vector<2x32xf32>
    %110 = arith.subf %109, %102 : vector<2x32xf32>
    %111 = arith.mulf %110, %108 : vector<2x32xf32>
    %112 = arith.truncf %111 : vector<2x32xf32> to vector<2x32xbf16>
    %c336 = arith.constant 336 : index
    %c0_38 = arith.constant 0 : index
    %113 = vector.load %arg2[%c336, %c0_38] : memref<560x128xbf16, #tpu.memory_space<vmem>>, vector<32x96xbf16>
    %cst_39 = arith.constant dense<0.000000e+00> : vector<2x96xf32>
    %114 = tpu.matmul %112, %113, %cst_39 {dimension_numbers = #tpu.dot_dimension_numbers<[1], [0], [0], [1], [0, 0, 1, 1], [], []>} : vector<2x32xbf16>, vector<32x96xbf16>, vector<2x96xf32> -> vector<2x96xf32>
    %c8 = arith.constant 8 : index
    %c0_40 = arith.constant 0 : index
    %115 = vector.load %arg3[%c8, %c0_40] : memref<16x128xf32, #tpu.memory_space<vmem>>, vector<1x96xf32>
    %116 = vector.broadcast %115 : vector<1x96xf32> to vector<2x96xf32>
    %117 = arith.addf %114, %116 : vector<2x96xf32>
    %118 = vector.extract_strided_slice %117 {offsets = [0, 0], sizes = [2, 64], strides = [1, 1]} : vector<2x96xf32> to vector<2x64xf32>
    %119 = arith.negf %118 : vector<2x64xf32>
    %120 = math.exp %119 : vector<2x64xf32>
    %cst_41 = arith.constant 1.000000e+00 : f32
    %121 = vector.broadcast %cst_41 : f32 to vector<2x64xf32>
    %122 = arith.addf %121, %120 : vector<2x64xf32>
    %123 = arith.divf %121, %122 : vector<2x64xf32>
    %124 = vector.extract_strided_slice %123 {offsets = [0, 0], sizes = [2, 32], strides = [1, 1]} : vector<2x64xf32> to vector<2x32xf32>
    %125 = vector.extract_strided_slice %123 {offsets = [0, 32], sizes = [2, 32], strides = [1, 1]} : vector<2x64xf32> to vector<2x32xf32>
    %126 = vector.extract_strided_slice %117 {offsets = [0, 64], sizes = [2, 32], strides = [1, 1]} : vector<2x96xf32> to vector<2x32xf32>
    %c9 = arith.constant 9 : index
    %c0_42 = arith.constant 0 : index
    %127 = vector.load %arg3[%c9, %c0_42] : memref<16x128xf32, #tpu.memory_space<vmem>>, vector<1x32xf32>
    %128 = vector.broadcast %127 : vector<1x32xf32> to vector<2x32xf32>
    %129 = arith.mulf %124, %128 : vector<2x32xf32>
    %130 = arith.addf %126, %129 : vector<2x32xf32>
    %131 = math.tanh %130 : vector<2x32xf32>
    %cst_43 = arith.constant 1.000000e+00 : f32
    %132 = vector.broadcast %cst_43 : f32 to vector<2x32xf32>
    %133 = arith.subf %132, %125 : vector<2x32xf32>
    %134 = arith.mulf %133, %131 : vector<2x32xf32>
    %135 = arith.truncf %88 : vector<2x32xf32> to vector<2x32xbf16>
    %c368 = arith.constant 368 : index
    %c0_44 = arith.constant 0 : index
    %136 = vector.load %arg2[%c368, %c0_44] : memref<560x128xbf16, #tpu.memory_space<vmem>>, vector<32x64xbf16>
    %cst_45 = arith.constant dense<0.000000e+00> : vector<2x64xf32>
    %137 = tpu.matmul %135, %136, %cst_45 {dimension_numbers = #tpu.dot_dimension_numbers<[1], [0], [0], [1], [0, 0, 1, 1], [], []>} : vector<2x32xbf16>, vector<32x64xbf16>, vector<2x64xf32> -> vector<2x64xf32>
    %138 = vector.shape_cast %137 : vector<2x64xf32> to vector<2x1x64xf32>
    %139 = vector.shape_cast %138 : vector<2x1x64xf32> to vector<2x1x64xf32>
    %140 = vector.broadcast %139 : vector<2x1x64xf32> to vector<2x8x64xf32>
    %141 = vector.shape_cast %140 : vector<2x8x64xf32> to vector<16x64xf32>
    %c0_46 = arith.constant 0 : index
    %c0_47 = arith.constant 0 : index
    %142 = vector.load %arg1[%c0_46, %c0_47] : memref<16x4xf32, #tpu.memory_space<vmem>>, vector<16x4xf32>
    %143 = arith.truncf %142 : vector<16x4xf32> to vector<16x4xbf16>
    %c400 = arith.constant 400 : index
    %c0_48 = arith.constant 0 : index
    %144 = vector.load %arg2[%c400, %c0_48] : memref<560x128xbf16, #tpu.memory_space<vmem>>, vector<4x64xbf16>
    %cst_49 = arith.constant dense<0.000000e+00> : vector<16x64xf32>
    %145 = tpu.matmul %143, %144, %cst_49 {dimension_numbers = #tpu.dot_dimension_numbers<[1], [0], [0], [1], [0, 0, 1, 1], [], []>} : vector<16x4xbf16>, vector<4x64xbf16>, vector<16x64xf32> -> vector<16x64xf32>
    %146 = arith.addf %141, %145 : vector<16x64xf32>
    %c10 = arith.constant 10 : index
    %c0_50 = arith.constant 0 : index
    %147 = vector.load %arg3[%c10, %c0_50] : memref<16x128xf32, #tpu.memory_space<vmem>>, vector<1x64xf32>
    %148 = vector.broadcast %147 : vector<1x64xf32> to vector<16x64xf32>
    %149 = arith.addf %146, %148 : vector<16x64xf32>
    %cst_51 = arith.constant 0.000000e+00 : f32
    %150 = vector.broadcast %cst_51 : f32 to vector<16x64xf32>
    %151 = arith.maximumf %149, %150 : vector<16x64xf32>
    %152 = arith.truncf %151 : vector<16x64xf32> to vector<16x64xbf16>
    %c416 = arith.constant 416 : index
    %c0_52 = arith.constant 0 : index
    %153 = vector.load %arg2[%c416, %c0_52] : memref<560x128xbf16, #tpu.memory_space<vmem>>, vector<64x128xbf16>
    %cst_53 = arith.constant dense<0.000000e+00> : vector<16x128xf32>
    %154 = tpu.matmul %152, %153, %cst_53 {dimension_numbers = #tpu.dot_dimension_numbers<[1], [0], [0], [1], [0, 0, 1, 1], [], []>} : vector<16x64xbf16>, vector<64x128xbf16>, vector<16x128xf32> -> vector<16x128xf32>
    %c11 = arith.constant 11 : index
    %c0_54 = arith.constant 0 : index
    %155 = vector.load %arg3[%c11, %c0_54] : memref<16x128xf32, #tpu.memory_space<vmem>>, vector<1x128xf32>
    %156 = vector.broadcast %155 : vector<1x128xf32> to vector<16x128xf32>
    %157 = arith.addf %154, %156 : vector<16x128xf32>
    %158 = tpu.iota {dimensions = array<i32: 1>} : vector<16x128xi32>
    %c0_i32 = arith.constant 0 : i32
    %159 = vector.broadcast %c0_i32 : i32 to vector<16x128xi32>
    %160 = arith.cmpi eq, %158, %159 : vector<16x128xi32>
    %cst_55 = arith.constant 0.000000e+00 : f32
    %161 = vector.broadcast %cst_55 : f32 to vector<16x128xf32>
    %162 = arith.maximumf %157, %161 : vector<16x128xf32>
    %163 = arith.select %160, %162, %157 : vector<16x128xi1>, vector<16x128xf32>
    %c0_56 = arith.constant 0 : index
    %c0_57 = arith.constant 0 : index
    %164 = vector.load %arg4[%c0_56, %c0_57] : memref<16x128xf32, #tpu.memory_space<vmem>>, vector<16x128xf32>
    tpu.vector_store %arg4[%c0_56, %c0_57], %163 {strides = array<i32>} : memref<16x128xf32, #tpu.memory_space<vmem>>, vector<16x128xf32>,
    %165 = arith.truncf %134 : vector<2x32xf32> to vector<2x32xbf16>
    %c480 = arith.constant 480 : index
    %c0_58 = arith.constant 0 : index
    %166 = vector.load %arg2[%c480, %c0_58] : memref<560x128xbf16, #tpu.memory_space<vmem>>, vector<32x32xbf16>
    %cst_59 = arith.constant dense<0.000000e+00> : vector<2x32xf32>
    %167 = tpu.matmul %165, %166, %cst_59 {dimension_numbers = #tpu.dot_dimension_numbers<[1], [0], [0], [1], [0, 0, 1, 1], [], []>} : vector<2x32xbf16>, vector<32x32xbf16>, vector<2x32xf32> -> vector<2x32xf32>
    %168 = arith.truncf %2 : vector<2x12xf32> to vector<2x12xbf16>
    %c512_60 = arith.constant 512 : index
    %c0_61 = arith.constant 0 : index
    %169 = vector.load %arg2[%c512_60, %c0_61] : memref<560x128xbf16, #tpu.memory_space<vmem>>, vector<12x32xbf16>
    %cst_62 = arith.constant dense<0.000000e+00> : vector<2x32xf32>
    %170 = tpu.matmul %168, %169, %cst_62 {dimension_numbers = #tpu.dot_dimension_numbers<[1], [0], [0], [1], [0, 0, 1, 1], [], []>} : vector<2x12xbf16>, vector<12x32xbf16>, vector<2x32xf32> -> vector<2x32xf32>
    %171 = arith.addf %167, %170 : vector<2x32xf32>
    %c12 = arith.constant 12 : index
    %c0_63 = arith.constant 0 : index
    %172 = vector.load %arg3[%c12, %c0_63] : memref<16x128xf32, #tpu.memory_space<vmem>>, vector<1x32xf32>
    %173 = vector.broadcast %172 : vector<1x32xf32> to vector<2x32xf32>
    %174 = arith.addf %171, %173 : vector<2x32xf32>
    %cst_64 = arith.constant 0.000000e+00 : f32
    %175 = vector.broadcast %cst_64 : f32 to vector<2x32xf32>
    %176 = arith.maximumf %174, %175 : vector<2x32xf32>
    %177 = arith.truncf %176 : vector<2x32xf32> to vector<2x32xbf16>
    %c528 = arith.constant 528 : index
    %c0_65 = arith.constant 0 : index
    %178 = vector.load %arg2[%c528, %c0_65] : memref<560x128xbf16, #tpu.memory_space<vmem>>, vector<32x128xbf16>
    %cst_66 = arith.constant dense<0.000000e+00> : vector<2x128xf32>
    %179 = tpu.matmul %177, %178, %cst_66 {dimension_numbers = #tpu.dot_dimension_numbers<[1], [0], [0], [1], [0, 0, 1, 1], [], []>} : vector<2x32xbf16>, vector<32x128xbf16>, vector<2x128xf32> -> vector<2x128xf32>
    %c13 = arith.constant 13 : index
    %c0_67 = arith.constant 0 : index
    %180 = vector.load %arg3[%c13, %c0_67] : memref<16x128xf32, #tpu.memory_space<vmem>>, vector<1x128xf32>
    %181 = vector.broadcast %180 : vector<1x128xf32> to vector<2x128xf32>
    %182 = arith.addf %179, %181 : vector<2x128xf32>
    %183 = arith.negf %182 : vector<2x128xf32>
    %184 = math.exp %183 : vector<2x128xf32>
    %cst_68 = arith.constant 1.000000e+00 : f32
    %185 = vector.broadcast %cst_68 : f32 to vector<2x128xf32>
    %186 = arith.addf %185, %184 : vector<2x128xf32>
    %187 = arith.divf %185, %186 : vector<2x128xf32>
    %c0_69 = arith.constant 0 : index
    %c0_70 = arith.constant 0 : index
    %188 = vector.load %arg5[%c0_69, %c0_70] : memref<2x640xf32, #tpu.memory_space<vmem>>, vector<2x32xf32>
    tpu.vector_store %arg5[%c0_69, %c0_70], %56 {strides = array<i32>} : memref<2x640xf32, #tpu.memory_space<vmem>>, vector<2x32xf32>,
    %c0_71 = arith.constant 0 : index
    %c128_72 = arith.constant 128 : index
    %189 = vector.load %arg5[%c0_71, %c128_72] : memref<2x640xf32, #tpu.memory_space<vmem>>, vector<2x32xf32>
    tpu.vector_store %arg5[%c0_71, %c128_72], %88 {strides = array<i32>} : memref<2x640xf32, #tpu.memory_space<vmem>>, vector<2x32xf32>,
    %c0_73 = arith.constant 0 : index
    %c256_74 = arith.constant 256 : index
    %190 = vector.load %arg5[%c0_73, %c256_74] : memref<2x640xf32, #tpu.memory_space<vmem>>, vector<2x32xf32>
    tpu.vector_store %arg5[%c0_73, %c256_74], %111 {strides = array<i32>} : memref<2x640xf32, #tpu.memory_space<vmem>>, vector<2x32xf32>,
    %c0_75 = arith.constant 0 : index
    %c384_76 = arith.constant 384 : index
    %191 = vector.load %arg5[%c0_75, %c384_76] : memref<2x640xf32, #tpu.memory_space<vmem>>, vector<2x32xf32>
    tpu.vector_store %arg5[%c0_75, %c384_76], %134 {strides = array<i32>} : memref<2x640xf32, #tpu.memory_space<vmem>>, vector<2x32xf32>,
    %c0_77 = arith.constant 0 : index
    %c512_78 = arith.constant 512 : index
    %192 = vector.load %arg5[%c0_77, %c512_78] : memref<2x640xf32, #tpu.memory_space<vmem>>, vector<2x128xf32>
    tpu.vector_store %arg5[%c0_77, %c512_78], %187 {strides = array<i32>} : memref<2x640xf32, #tpu.memory_space<vmem>>, vector<2x128xf32>,
    return
  }
}

</mosaic_0001>

<bundles_post_ra>
// kernel: zsla_forward.1
= control target key start
LH: loop header
LB: loop body
LE: loop exit
PB: predicated region body
PF: predicated region fallthrough
CT: control target
= control target key end

     0   :  { %11 = vsyncpa [#allocation3], 0  ;;  %s1646_s18 = smov [#allocation2]   ;;  %s1918_s0 = inlined_call_operand.vmem [shape: f32[2,640], index: 0, kind: input, shape index: {}]   ;;  %s1919_s1 = inlined_call_operand.vmem [shape: f32[16,4], index: 1, kind: input, shape index: {}]   ;;  %s1920_s2 = inlined_call_operand.hbm [shape: bf16[560,128], index: 2, kind: input, shape index: {}]   ;;  %s1921_s3 = inlined_call_operand.vmem [shape: f32[16,128], index: 3, kind: input, shape index: {}]   ;;  %s1922_s4 = inlined_call_operand.vmem [shape: f32[16,128], index: 4, kind: output, shape index: {0}]   ;;  %s1923_s5 = inlined_call_operand.vmem [shape: f32[2,640], index: 5, kind: output, shape index: {1}]  }
   0x1   :  { %s21_s19 = sshll.u32 %s1646_s18, 4  ;;  %s1622_s22 = scalar_lea.hbm %s1920_s2, 4480  ;;  %s22_s19 = int_to_ptr.vmem [resolvable:$true] %s21_s19 }
   0x2   :  { %p1623_p0 = scmp.ne.s32.totalorder %s1920_s2, %s1622_s22  ;;  %p1626_p1 = scmp.lt.u32.totalorder %s1622_s22, %s1920_s2 }
   0x4   :  { %p1628_p2 = pnand %p1626_p1, %p1623_p0 }
   0x6   :  { %1631 = shalt.err (!%p1628_p2)
}
   0x7   :  { %s1632_s27 = scalar_lea.vmem %s22_s19, 4480  ;;  %p1637_p4 = scmp.lt.s32.totalorder %s22_s19, %s22_s19 }
   0x8   :  { %p1633_p3 = scmp.ne.s32.totalorder %s22_s19, %s1632_s27  ;;  %p1638_p5 = scmp.lt.s32.totalorder %s1632_s27, %s1632_s27 }
   0xa   :  { %p1639_p6 = por %p1638_p5, %p1637_p4 }
   0xc   :  { %p1640_p7 = pnand %p1639_p6, %p1633_p3 }
   0xe   :  { %1643 = shalt.err (!%p1640_p7)
}
   0xf   :  { %s1647_s28 = smov 64   ;;  %s1648_s29 = smov 4  }
  0x10   :  { %27 = dma.hbm_to_vmem [thread:$0]  %s1920_s2, 4480, %s22_s19, [#allocation3], %s1647_s28, %s1647_s28, %s1648_s29  }
  0x11   :  { %1644 = dma.done.wait [#allocation3], 4480  }
  0x12   :  { %1645 = vsyncadd [#allocation3], 4294962816  ;;  %v1649_v0 = vmov 0.0   ;;  %vm1650_vm0 = vmmov 0   ;;  %v1560_v1 = vld [vmem:[#allocation2] sm:$0xff]   ;;  %v1561_v2 = vld [vmem:[#allocation2 + $0x8] sm:$0xff]   ;;  %v437_v46 = vlaneseq }
  0x13   :  { %1421 = vmatprep.subr.bf16.mxu0 %v1649_v0  ;;  %1425 = vmatprep.mubr.msk.bf16.mxu0 %vm1650_vm0, %v1649_v0  ;;  %v34_v3 = vld [vmem:[%s1918_s0] sm:$0x3]  ;;  %v1562_v4 = vld [vmem:[#allocation2 + $0x10] sm:$0xff]   ;;  %v1563_v6 = vld [vmem:[#allocation2 + $0x18] sm:$0xff]   ;;  %vm61_vm1 = vcmask 261120   ;;  %vm234_vm2 = vcmask 1045504  }
  0x14   :  { %1429 = vmatprep.subr.bf16.mxu1 %v1649_v0  ;;  %1445 = vmatprep.mubr.msk.bf16.mxu1 %vm1650_vm0, %v1649_v0  ;;  %v39_v5 = vpack.c.bf16 %v34_v3, %v34_v3  ;;  %v1564_v7 = vld [vmem:[#allocation2 + $0x20] sm:$0xff]   ;;  %v1565_v8 = vld [vmem:[#allocation2 + $0x28] sm:$0xff]   ;;  %v1566_v9 = vld [vmem:[#allocation2 + $0x30] sm:$0xff]   ;;  %vm230_vm3 = vcmask 97280   ;;  %v1651_v44 = vmov 1983009808  }
  0x15   :  { %1422 = vmatpush3.bf16.msra.mxu0 %v1560_v1  ;;  %1430 = vmatpush3.bf16.msra.mxu1 %v1562_v4  ;;  %v1567_v10 = vld [vmem:[#allocation2 + $0x38] sm:$0xff]   ;;  %v1568_v11 = vld [vmem:[#allocation2 + $0x40] sm:$0xff]   ;;  %v1569_v12 = vld [vmem:[#allocation2 + $0x48] sm:$0xff]   ;;  %v435_v45 = vunpack.c.l.s4 %v1651_v44  ;;  %v1755_v53 = vshrl.u32 %v437_v46, 7  ;;  %s1652_s18 = smov 32   ;;  %s1653_s23 = smov 96  }
  0x16   :  { %1423 = vmatprep.subr.bf16.mxu0 %v1649_v0  ;;  %1431 = vmatprep.subr.bf16.mxu1 %v1649_v0  ;;  %v1570_v13 = vld [vmem:[#allocation2 + $0x60] sm:$0x3f]   ;;  %v1571_v17 = vld [vmem:[#allocation2 + $0x50] sm:$0xff]   ;;  %v1572_v26 = vld [vmem:[#allocation2 + $0x58] sm:$0xff]   ;;  %vm902_vm4 = vcmask 1041408   ;;  %vm898_vm5 = vcmask 31744  }
  0x17   :  { %v35_v14 = vld [vmem:[%s1918_s0 + $0x2] sm:$0x3]  ;;  %v236_v15 = vsel %vm234_vm2, %v1570_v13, 0  ;;  %v1304_v18 = vld [vmem:[%s1921_s3] ss:$0 sm:$0xff]  ;;  %v1573_v39 = vld [vmem:[#allocation2 + $0x68] sm:$0xff]   ;;  %v436_v52 = vunpack.c.0.s8 %v435_v45 }
  0x18   :  { %v222_v16 = vpack.c.bf16 %v35_v14, %v35_v14  ;;  %v1327_v27 = vld [vmem:[%s1921_s3 + $0x3] ss:$0 sm:$0xff]  ;;  %v1308_v32 = vld [vmem:[%s1921_s3 + $0x1] ss:$0 sm:$0xff]  ;;  %v1574_v41 = vld [vmem:[#allocation2 + $0x70] sm:$0xff]   ;;  %vm996_vm6 = vcmask 523264  }
  0x19   :  { %1424 = vmatpush3.bf16.msra.mxu0 %v1561_v2  ;;  %1432 = vmatpush3.bf16.msra.mxu1 %v1563_v6  ;;  %v37_v42 = vld [vmem:[%s1918_s0 + $0x6] sm:$0x3]  ;;  %v1758_v55 = vsub.s32 %v436_v52, %v1755_v53  ;;  %v1325_v62 = vld [vmem:[%s1921_s3 + $0x2] ss:$0 sm:$0xff]  ;;  %v38_v13 = vld [vmem:[%s1918_s0 + $0x8] sm:$0x3] }
  0x1a   :  { %1449 = vmatprep.subr.bf16.mxu0 %v1649_v0  ;;  %1433 = vmatprep.subr.bf16.mxu1 %v1649_v0  ;;  %v333_v43 = vpack.c.bf16 %v37_v42, %v37_v42  ;;  %v1578_v14 = vld [vmem:[#allocation2 + $0x80] sm:$0xff]   ;;  %vm1256_vm8 = vcmask 254976  }
  0x1b   :  { %412 = vrot.lane.b32.xlu0 %v1327_v27, %s1647_s28  ;;  %v440_v61 = vrot.slane %v37_v42, %v1758_v55  ;;  %v615_v45 = vrot.slane %v38_v13, %v1758_v55 }
  0x1c   :  { %1426 = vmatmul.mubr.msk.bf16.vlgmr.msra.gmra.mrb[0].mxu0 %vm61_vm1, %v39_v5 }
  0x1d   :  { %1451 = vmatprep.mubr.msk.bf16.mxu0 %vm1650_vm0, %v1649_v0  ;;  %1434 = vmatpush3.bf16.msra.mxu1 %v1564_v7 }
  0x1e   :  { %1435 = vmatprep.subr.bf16.mxu1 %v1649_v0  ;;  %1450 = vmatpush3.bf16.msra.mxu0 %v236_v15  ;;  %v451_v15 = vpack.c.bf16 %v38_v13, %v38_v13 }
  0x1f   :  { %1455 = vmatprep.subr.bf16.mxu0 %v1649_v0 }
  0x21   :  { %1436 = vmatpush3.bf16.msra.mxu1 %v1565_v8 }
  0x22   :  { %1437 = vmatprep.subr.bf16.mxu1 %v1649_v0 }
  0x24   :  { %1452 = vmatmul.mubr.msk.bf16.vlgmr.msra.gmra.mrb[4].mxu0 %vm230_vm3, %v222_v16 }
  0x25   :  { %1438 = vmatpush3.bf16.msra.mxu1 %v1566_v9  ;;  %1456 = vmatpush3.bf16.msra.mxu0 %v1571_v17  ;;  %v1336_v17 = vld [vmem:[%s1921_s3 + $0x5] ss:$0 sm:$0xff] }
  0x26   :  { %1439 = vmatprep.subr.bf16.mxu1 %v1649_v0  ;;  %1459 = vmatprep.mubr.msk.bf16.mxu0 %vm1650_vm0, %v1649_v0 }
  0x27   :  { %1457 = vmatprep.subr.bf16.mxu0 %v1649_v0 }
  0x29   :  { %1440 = vmatpush3.bf16.msra.mxu1 %v1567_v10  ;;  %1458 = vmatpush3.bf16.msra.mxu0 %v1572_v26  ;;  %v1575_v10 = vld [vmem:[#allocation2 + $0x88] sm:$0xff]  }
  0x2a   :  { %1441 = vmatprep.subr.bf16.mxu1 %v1649_v0  ;;  %1463 = vmatprep.subr.bf16.mxu0 %v1649_v0 }
  0x2d   :  { %1442 = vmatpush3.bf16.msra.mxu1 %v1568_v11  ;;  %v1577_v11 = vld [vmem:[#allocation2 + $0x78] sm:$0xff]  }
  0x2e   :  { %1443 = vmatprep.subr.bf16.mxu1 %v1649_v0 }
  0x31   :  { %1444 = vmatpush3.bf16.msra.mxu1 %v1569_v12  ;;  %v1576_v12 = vld [vmem:[#allocation2 + $0x90] sm:$0xff]  }
  0x32   :  { %1479 = vmatprep.subr.bf16.mxu1 %v1649_v0 }
  0x8d   :  { %v413_v54 = vpop.permute.xlu0 %412 }
  0xef   :  { %v99_v19 = vpop.f32.mrb[0].mxu0 }
  0xf0   :  { %v100_v20 = vadd.f32 %v1304_v18, %v99_v19  ;;  %v1427_v21 = vpop.f32.mrb[1].mxu0 }
  0xf1   :  { %v102_v22 = vpop.f32.mrb[2].mxu0 }
  0xf2   :  { %v105_v23 = vmax.f32 %v100_v20, 0.0  ;;  %v1428_v24 = vpop.f32.mrb[3].mxu0 }
  0xf4   :  { %v106_v25 = vpack.c.bf16 %v105_v23, %v105_v23 }
  0xf6   :  { %1446 = vmatmul.mubr.bf16.vlgmr.msra.gmra.mrb[0].mxu1 %v106_v25 }
  0xf7   :  { %1483 = vmatprep.mubr.msk.bf16.mxu1 %vm1650_vm0, %v1649_v0  ;;  %v272_v28 = vpop.f32.mrb[4].mxu0  ;;  %1480 = vmatpush3.bf16.msra.mxu1 %v1577_v11 }
  0xf8   :  { %v1453_v29 = vpop.f32.mrb[5].mxu0  ;;  %1481 = vmatprep.subr.bf16.mxu1 %v1649_v0 }
  0xf9   :  { %v275_v30 = vpop.f32.mrb[6].mxu0 }
  0xfa   :  { %v1454_v31 = vpop.f32.mrb[7].mxu0 }
  0xfb   :  { %1482 = vmatpush3.bf16.msra.mxu1 %v1578_v14  ;;  %v1342_v14 = vld [vmem:[%s1921_s3 + $0x7] ss:$0 sm:$0xff] }
  0xfc   :  { %1495 = vmatprep.subr.bf16.mxu1 %v1649_v0 }
 0x1c9   :  { %v210_v33 = vpop.f32.mrb[0].mxu1 }
 0x1ca   :  { %v211_v34 = vadd.f32 %v1308_v32, %v210_v33  ;;  %v1447_v35 = vpop.f32.mrb[1].mxu1  ;;  %v1331_v32 = vld [vmem:[%s1921_s3 + $0x4] ss:$0 sm:$0xff] }
 0x1cb   :  { %v213_v36 = vpop.f32.mrb[2].mxu1 }
 0x1cc   :  { %v216_v37 = vmax.f32 %v211_v34, 0.0  ;;  %v1448_v38 = vpop.f32.mrb[3].mxu1 }
 0x1ce   :  { %v217_v40 = vpack.c.bf16 %v216_v37, %v216_v37 }
 0x1d0   :  { %1460 = vmatmul.mubr.msk.bf16.vlgmr.msra.gmra.mrb[8].mxu0 %vm61_vm1, %v217_v40 }
 0x1d1   :  { %1464 = vmatpush3.bf16.msra.mxu0 %v1573_v39  ;;  %1467 = vmatprep.mubr.msk.bf16.mxu0 %vm1650_vm0, %v1649_v0 }
 0x1d2   :  { %1465 = vmatprep.subr.bf16.mxu0 %v1649_v0 }
 0x1d5   :  { %1466 = vmatpush3.bf16.msra.mxu0 %v1574_v41 }
 0x1d6   :  { %1471 = vmatprep.subr.bf16.mxu0 %v1649_v0 }
 0x1d8   :  { %1468 = vmatmul.mubr.msk.bf16.vlgmr.msra.gmra.mrb[12].mxu0 %vm61_vm1, %v333_v43 }
 0x1d9   :  { %1475 = vmatprep.mubr.msk.bf16.mxu0 %vm1650_vm0, %v1649_v0  ;;  %1472 = vmatpush3.bf16.msra.mxu0 %v1575_v10 }
 0x1da   :  { %1473 = vmatprep.subr.bf16.mxu0 %v1649_v0 }
 0x1dd   :  { %1474 = vmatpush3.bf16.msra.mxu0 %v1576_v12 }
 0x1de   :  { %1487 = vmatprep.subr.bf16.mxu0 %v1649_v0 }
 0x1e0   :  { %1476 = vmatmul.mubr.msk.bf16.vlgmr.msra.gmra.mrb[16].mxu0 %vm61_vm1, %v451_v15 }
 0x1e1   :  { %1491 = vmatprep.mubr.msk.bf16.mxu0 %vm1650_vm0, %v1649_v0 }
 0x2a3   :  { %v327_v47 = vpop.f32.mrb[8].mxu0 }
 0x2a4   :  { %v328_v48 = vadd.f32 %v327_v47, %v272_v28  ;;  %v1461_v49 = vpop.f32.mrb[9].mxu0 }
 0x2a5   :  { %v330_v50 = vpop.f32.mrb[10].mxu0  ;;  %v1579_v49 = vld [vmem:[#allocation2 + $0x98] sm:$0xff]  }
 0x2a6   :  { %v1462_v51 = vpop.f32.mrb[11].mxu0  ;;  %v398_v63 = vadd.f32 %v1325_v62, %v328_v48  ;;  %1488 = vmatpush3.bf16.msra.mxu0 %v1579_v49  ;;  %v1580_v50 = vld [vmem:[#allocation2 + $0xa0] sm:$0xff]  }
 0x2a7   :  { %1489 = vmatprep.subr.bf16.mxu0 %v1649_v0 }
 0x2aa   :  { %1490 = vmatpush3.bf16.msra.mxu0 %v1580_v50 }
 0x2ab   :  { %v387_v56 = vpop.f32.mrb[12].mxu0  ;;  %1503 = vmatprep.subr.bf16.mxu0 %v1649_v0 }
 0x2ac   :  { %v1469_v57 = vpop.f32.mrb[13].mxu0  ;;  %v415_v58 = vadd.f32 %v413_v54, %v387_v56  ;;  %v399_v1 = vadd.f32 %v398_v63, %v387_v56 }
 0x2ad   :  { %v390_v59 = vpop.f32.mrb[14].mxu0 }
 0x2ae   :  { %417 = vrot.lane.b32.xlu0 %v415_v58, %s1647_s28  ;;  %v1470_v60 = vpop.f32.mrb[15].mxu0  ;;  %v1326_v2 = vmul.f32 -1.442695, %v399_v1  ;;  %v1337_v1 = vld [vmem:[%s1921_s3 + $0x6] ss:$0 sm:$0xff] }
 0x2b0   :  { %1594 = vpow2.f32 %v1326_v2 }
 0x2b2   :  { %441 = vrot.lane.b32.xlu0 %v440_v61, %s1652_s18  ;;  %v1581_v61 = vld [vmem:[#allocation2 + $0xb8] sm:$0xff]  }
 0x2b3   :  { %v505_v25 = vpop.f32.mrb[16].mxu0 }
 0x2b4   :  { %v1477_v26 = vpop.f32.mrb[17].mxu0 }
 0x2b5   :  { %v508_v27 = vpop.f32.mrb[18].mxu0 }
 0x2b6   :  { %587 = vrot.lane.b32.xlu0 %v1336_v17, %s1647_s28  ;;  %v1478_v28 = vpop.f32.mrb[19].mxu0  ;;  %v897_v27 = vld [vmem:[#allocation2 + $0xc8] sm:$0x3] }
 0x2b7   :  { %v904_v28 = vsel %vm902_vm4, %v897_v27, 0 }
 0x2ba   :  { %v1595_v3 = vpop.eup %1594 }
 0x2bb   :  { %v403_v4 = vadd.f32 1.0, %v1595_v3 }
 0x2bd   :  { %1596 = vrcp.f32 %v403_v4 }
 0x2c7   :  { %v1597_v5 = vpop.eup %1596 }
 0x2c8   :  { %v427_v19 = vsub.f32 1.0, %v1597_v5 }
 0x320   :  { %v418_v6 = vpop.permute.xlu0 %417 }
 0x321   :  { %v420_v7 = vmul.f32 %v1597_v5, %v418_v6 }
 0x323   :  { %422 = vrot.lane.b32.xlu1 %v420_v7, %s1647_s28 }
 0x324   :  { %v442_v18 = vpop.permute.xlu0 %441 }
 0x325   :  { %v444_v21 = vmul.f32 %v1597_v5, %v442_v18 }
 0x328   :  { %v588_v29 = vpop.permute.xlu0 %587 }
 0x329   :  { %v590_v30 = vadd.f32 %v588_v29, %v505_v25 }
 0x395   :  { %v423_v8 = vpop.permute.xlu1 %422 }
 0x396   :  { %v425_v9 = vadd.f32 %v423_v8, %v398_v63  ;;  %v1582_v63 = vld [vmem:[#allocation2 + $0xc0] sm:$0xff]  }
 0x398   :  { %1598 = vtanh.f32 %v425_v9 }
 0x3a2   :  { %v1599_v16 = vpop.eup %1598 }
 0x3a3   :  { %429 = vrot.lane.b32.xlu1 %v1599_v16, %s1653_s23 }
 0x415   :  { %v430_v20 = vpop.permute.xlu1 %429 }
 0x416   :  { %v432_v22 = vmul.f32 %v430_v20, %v427_v19  ;;  %v1583_v19 = vld [vmem:[#allocation2 + $0xa8] sm:$0xff]   ;;  %v1584_v20 = vld [vmem:[#allocation2 + $0xb0] sm:$0xff]  }
 0x418   :  { %v1782_v23 = vadd.f32 %v444_v21, %v432_v22 }
 0x41a   :  { %v446_v24 = vpack.c.bf16 %v1782_v23, %v1782_v23 }
 0x41c   :  { %517 = vrot.lane.b32.xlu1 %v446_v24, %s1653_s23 }
 0x420   :  { %592 = vrot.lane.b32.xlu1 %v590_v30, %s1647_s28  ;;  %v894_v30 = vld [vmem:[%s1919_s1] sm:$0xff] }
 0x48e   :  { %v518_v31 = vpop.permute.xlu1 %517 }
 0x48f   :  { %1484 = vmatmul.mubr.msk.bf16.vlgmr.msra.gmra.mrb[4].mxu1 %vm61_vm1, %v518_v31  ;;  %v895_v31 = vld [vmem:[%s1919_s1 + $0x8] sm:$0xff] }
 0x490   :  { %1499 = vmatprep.mubr.msk.bf16.mxu1 %vm1650_vm0, %v1649_v0  ;;  %1496 = vmatpush3.bf16.msra.mxu1 %v1583_v19  ;;  %v1252_v19 = vrot.slane %v1782_v23, %v1758_v55  ;;  %v1354_v23 = vld [vmem:[%s1921_s3 + $0xb] ss:$0 sm:$0xff] }
 0x491   :  { %1497 = vmatprep.subr.bf16.mxu1 %v1649_v0 }
 0x492   :  { %v593_v42 = vpop.permute.xlu1 %592 }
 0x494   :  { %1498 = vmatpush3.bf16.msra.mxu1 %v1584_v20  ;;  %v1590_v20 = vld [vmem:[#allocation2 + $0xf0] sm:$0xff]  }
 0x495   :  { %1511 = vmatprep.subr.bf16.mxu1 %v1649_v0 }
 0x562   :  { %v568_v33 = vpop.f32.mrb[4].mxu1 }
 0x563   :  { %v569_v34 = vadd.f32 %v1331_v32, %v568_v33  ;;  %v1485_v35 = vpop.f32.mrb[5].mxu1  ;;  %v896_v32 = vpack.c.bf16 %v895_v31, %v894_v30  ;;  %v1585_v33 = vld [vmem:[#allocation2 + $0xd0] sm:$0xff]  }
 0x564   :  { %v571_v36 = vpop.f32.mrb[6].mxu1  ;;  %v1587_v35 = vld [vmem:[#allocation2 + $0xe0] sm:$0xff]  }
 0x565   :  { %v574_v37 = vadd.f32 %v569_v34, %v505_v25  ;;  %v1486_v38 = vpop.f32.mrb[7].mxu1  ;;  %v1588_v36 = vld [vmem:[#allocation2 + $0xe8] sm:$0xff]  }
 0x567   :  { %v1335_v39 = vmul.f32 -1.442695, %v574_v37  ;;  %v1654_v37 = vmov 1966171168  }
 0x568   :  { %v863_v38 = vunpack.c.l.s4 %v1654_v37 }
 0x569   :  { %1600 = vpow2.f32 %v1335_v39 }
 0x56a   :  { %v864_v39 = vunpack.c.0.s8 %v863_v38 }
 0x573   :  { %v1601_v40 = vpop.eup %1600 }
 0x574   :  { %v578_v41 = vadd.f32 1.0, %v1601_v40  ;;  %v867_v40 = vsub.s32 %v864_v39, %v1755_v53 }
 0x576   :  { %1602 = vrcp.f32 %v578_v41 }
 0x580   :  { %v1603_v43 = vpop.eup %1602 }
 0x581   :  { %v595_v44 = vmul.f32 %v1603_v43, %v593_v42  ;;  %v602_v54 = vsub.f32 1.0, %v1603_v43  ;;  %v1343_v42 = vld [vmem:[%s1921_s3 + $0x8] ss:$0 sm:$0xff] }
 0x583   :  { %597 = vrot.lane.b32.xlu0 %v595_v44, %s1647_s28 }
 0x587   :  { %616 = vrot.lane.b32.xlu0 %v615_v45, %s1652_s18 }
 0x5f5   :  { %v598_v47 = vpop.permute.xlu0 %597 }
 0x5f6   :  { %v600_v48 = vadd.f32 %v598_v47, %v569_v34  ;;  %v1586_v34 = vld [vmem:[#allocation2 + $0xd8] sm:$0xff]  }
 0x5f8   :  { %1604 = vtanh.f32 %v600_v48 }
 0x5f9   :  { %v617_v52 = vpop.permute.xlu0 %616 }
 0x5fa   :  { %v619_v57 = vmul.f32 %v1603_v43, %v617_v52  ;;  %v886_v52 = vsub.s32 0, %v1755_v53 }
 0x602   :  { %v1605_v51 = vpop.eup %1604 }
 0x603   :  { %604 = vrot.lane.b32.xlu1 %v1605_v51, %s1653_s23 }
 0x675   :  { %v605_v56 = vpop.permute.xlu1 %604 }
 0x676   :  { %v607_v58 = vmul.f32 %v605_v56, %v602_v54 }
 0x678   :  { %v1800_v59 = vadd.f32 %v619_v57, %v607_v58  ;;  %v1353_v58 = vld [vmem:[%s1921_s3 + $0xa] ss:$0 sm:$0xff] }
 0x67a   :  { %v621_v60 = vpack.c.bf16 %v1800_v59, %v1800_v59  ;;  %v1265_v39 = vrot.slane %v1800_v59, %v1758_v55 }
 0x67c   :  { %632 = vrot.lane.b32.xlu1 %v621_v60, %s1653_s23 }
 0x6ee   :  { %v633_v62 = vpop.permute.xlu1 %632 }
 0x6ef   :  { %1492 = vmatmul.mubr.msk.bf16.vlgmr.msra.gmra.mrb[20].mxu0 %vm61_vm1, %v633_v62 }
 0x6f0   :  { %1504 = vmatpush3.bf16.msra.mxu0 %v1581_v61  ;;  %1507 = vmatprep.mubr.msk.bf16.mxu0 %vm1650_vm0, %v1649_v0 }
 0x6f1   :  { %1505 = vmatprep.subr.bf16.mxu0 %v1649_v0 }
 0x6f4   :  { %1506 = vmatpush3.bf16.msra.mxu0 %v1582_v63 }
 0x6f5   :  { %1517 = vmatprep.subr.bf16.mxu0 %v1649_v0 }
 0x6f7   :  { %1508 = vmatmul.mubr.msk.bf16.vlgmr.msra.gmra.mrb[24].mxu0 %vm61_vm1, %v633_v62 }
 0x6f8   :  { %1525 = vmatprep.mubr.msk.bf16.mxu0 %vm1650_vm0, %v1649_v0  ;;  %1518 = vmatpush3.bf16.msra.mxu0 %v1585_v33 }
 0x6f9   :  { %1519 = vmatprep.subr.bf16.mxu0 %v1649_v0 }
 0x6fc   :  { %1520 = vmatpush3.bf16.msra.mxu0 %v1586_v34 }
 0x6fd   :  { %1521 = vmatprep.subr.bf16.mxu0 %v1649_v0 }
 0x700   :  { %1522 = vmatpush3.bf16.msra.mxu0 %v1587_v35 }
 0x701   :  { %1523 = vmatprep.subr.bf16.mxu0 %v1649_v0 }
 0x704   :  { %1524 = vmatpush3.bf16.msra.mxu0 %v1588_v36 }
 0x705   :  { %1543 = vmatprep.subr.bf16.mxu0 %v1649_v0 }
 0x7c2   :  { %v683_v2 = vpop.f32.mrb[20].mxu0 }
 0x7c3   :  { %v684_v3 = vadd.f32 %v1337_v1, %v683_v2  ;;  %v1493_v4 = vpop.f32.mrb[21].mxu0 }
 0x7c4   :  { %v686_v5 = vpop.f32.mrb[22].mxu0 }
 0x7c5   :  { %v1341_v6 = vmul.f32 -1.442695, %v684_v3  ;;  %v1494_v7 = vpop.f32.mrb[23].mxu0 }
 0x7c7   :  { %1606 = vpow2.f32 %v1341_v6 }
 0x7ca   :  { %v855_v8 = vpop.f32.mrb[24].mxu0 }
 0x7cb   :  { %v1509_v9 = vpop.f32.mrb[25].mxu0  ;;  %v868_v41 = vrot.slane %v855_v8, %v867_v40 }
 0x7cc   :  { %v858_v10 = vpop.f32.mrb[26].mxu0  ;;  %v1348_v9 = vld [vmem:[%s1921_s3 + $0x9] ss:$0 sm:$0xff] }
 0x7cd   :  { %v1510_v11 = vpop.f32.mrb[27].mxu0  ;;  %v869_v44 = vcombine.high %v868_v41, %v868_v41  ;;  %v876_v49 = vrot.slane %v868_v41, %v867_v40 }
 0x7cf   :  { %v883_v54 = vrot.slane %v869_v44, %v867_v40  ;;  %v887_v56 = vrot.slane %v876_v49, %v886_v52  ;;  %v1593_v49 = vld [vmem:[#allocation2 + $0x110] sm:$0xff]  }
 0x7d1   :  { %v1607_v12 = vpop.eup %1606  ;;  %v891_v62 = vrot.slane %v883_v54, %v886_v52 }
 0x7d2   :  { %v692_v13 = vadd.f32 1.0, %v1607_v12 }
 0x7d4   :  { %1608 = vrcp.f32 %v692_v13 }
 0x7de   :  { %v1609_v15 = vpop.eup %1608 }
 0x7df   :  { %v700_v16 = vmul.f32 %v1609_v15, %v1342_v14  ;;  %v707_v22 = vsub.f32 1.0, %v1609_v15  ;;  %v1589_v15 = vld [vmem:[#allocation2 + $0x100] sm:$0x3f]  }
 0x7e1   :  { %702 = vrot.lane.b32.xlu0 %v700_v16, %s1647_s28  ;;  %v36_v16 = vld [vmem:[%s1918_s0 + $0x4] sm:$0x3] }
 0x853   :  { %v703_v17 = vpop.permute.xlu0 %702 }
 0x854   :  { %v705_v18 = vadd.f32 %v703_v17, %v684_v3  ;;  %v1067_v17 = vsel %vm234_vm2, %v1589_v15, 0 }
 0x856   :  { %1610 = vtanh.f32 %v705_v18  ;;  %v1055_v18 = vpack.c.bf16 %v36_v16, %v36_v16 }
 0x860   :  { %v1611_v21 = vpop.eup %1610 }
 0x861   :  { %709 = vrot.lane.b32.xlu1 %v1611_v21, %s1653_s23 }
 0x8d3   :  { %v710_v24 = vpop.permute.xlu1 %709 }
 0x8d4   :  { %v1823_v25 = vmul.f32 %v710_v24, %v707_v22  ;;  %v1591_v22 = vld [vmem:[#allocation2 + $0xf8] sm:$0xff]   ;;  %v1042_v24 = vand.u32 127, %v437_v46 }
 0x8d6   :  { %v713_v26 = vpack.c.bf16 %v1823_v25, %v1823_v25  ;;  %v1277_v21 = vrot.slane %v1823_v25, %v1758_v55  ;;  %vm1043_vm7 = vcmp.eq.s32.totalorder %v1042_v24, 0 }
 0x8d8   :  { %724 = vrot.lane.b32.xlu0 %v713_v26, %s1653_s23 }
 0x94a   :  { %v725_v29 = vpop.permute.xlu0 %724 }
 0x94b   :  { %1500 = vmatmul.mubr.msk.bf16.vlgmr.msra.gmra.mrb[8].mxu1 %vm61_vm1, %v725_v29 }
 0x94c   :  { %1512 = vmatpush3.bf16.msra.mxu1 %v904_v28  ;;  %1513 = vmatprep.mubr.msk.bf16.mxu1 %vm1650_vm0, %v1649_v0 }
 0x94d   :  { %1529 = vmatprep.subr.bf16.mxu1 %v1649_v0 }
 0x953   :  { %1514 = vmatmul.mubr.msk.bf16.vlgmr.msra.gmra.mrb[12].mxu1 %vm898_vm5, %v896_v32 }
 0x954   :  { %1531 = vmatprep.mubr.msk.bf16.mxu1 %vm1650_vm0, %v1649_v0  ;;  %1530 = vmatpush3.bf16.msra.mxu1 %v1067_v17 }
 0x955   :  { %1535 = vmatprep.subr.bf16.mxu1 %v1649_v0 }
 0x95b   :  { %1532 = vmatmul.mubr.msk.bf16.vlgmr.msra.gmra.mrb[16].mxu1 %vm230_vm3, %v1055_v18 }
 0x95c   :  { %1536 = vmatpush3.bf16.msra.mxu1 %v1590_v20  ;;  %1539 = vmatprep.mubr.msk.bf16.mxu1 %vm1650_vm0, %v1649_v0 }
 0x95d   :  { %1537 = vmatprep.subr.bf16.mxu1 %v1649_v0 }
 0x960   :  { %1538 = vmatpush3.bf16.msra.mxu1 %v1591_v22 }
 0xa1e   :  { %v775_v43 = vpop.f32.mrb[8].mxu1 }
 0xa1f   :  { %v776_v45 = vadd.f32 %v1343_v42, %v775_v43  ;;  %v1501_v47 = vpop.f32.mrb[9].mxu1 }
 0xa20   :  { %v778_v48 = vpop.f32.mrb[10].mxu1 }
 0xa21   :  { %v1347_v50 = vmul.f32 -1.442695, %v776_v45  ;;  %v1502_v51 = vpop.f32.mrb[11].mxu1 }
 0xa22   :  { %v1365_v51 = vld [vmem:[%s1921_s3 + $0xc] ss:$0 sm:$0xff] }
 0xa23   :  { %1612 = vpow2.f32 %v1347_v50 }
 0xa26   :  { %v940_v57 = vpop.f32.mrb[12].mxu1 }
 0xa27   :  { %v947_v60 = vadd.f32 %v940_v57, %v887_v56  ;;  %v1515_v61 = vpop.f32.mrb[13].mxu1 }
 0xa28   :  { %v943_v63 = vpop.f32.mrb[14].mxu1 }
 0xa29   :  { %v954_v1 = vadd.f32 %v1353_v58, %v947_v60  ;;  %v948_v2 = vadd.f32 %v943_v63, %v891_v62  ;;  %v1516_v3 = vpop.f32.mrb[15].mxu1 }
 0xa2b   :  { %v955_v4 = vadd.f32 %v1353_v58, %v948_v2  ;;  %v956_v6 = vmax.f32 %v954_v1, 0.0 }
 0xa2d   :  { %v1613_v5 = vpop.eup %1612  ;;  %v957_v7 = vmax.f32 %v955_v4, 0.0 }
 0xa2e   :  { %v784_v53 = vadd.f32 1.0, %v1613_v5  ;;  %v1103_v42 = vpop.f32.mrb[16].mxu1 }
 0xa2f   :  { %v958_v8 = vpack.c.bf16 %v957_v7, %v956_v6  ;;  %v1533_v43 = vpop.f32.mrb[17].mxu1 }
 0xa30   :  { %1614 = vrcp.f32 %v784_v53  ;;  %v1106_v44 = vpop.f32.mrb[18].mxu1 }
 0xa31   :  { %1526 = vmatmul.mubr.msk.bf16.vlgmr.msra.gmra.mrb[28].mxu0 %vm996_vm6, %v958_v8 }
 0xa32   :  { %1547 = vmatprep.mubr.msk.bf16.mxu0 %vm1650_vm0, %v1649_v0 }
 0xa3a   :  { %v1615_v10 = vpop.eup %1614 }
 0xa3b   :  { %v792_v11 = vmul.f32 %v1615_v10, %v1348_v9  ;;  %v799_v46 = vsub.f32 1.0, %v1615_v10 }
 0xa3d   :  { %794 = vrot.lane.b32.xlu1 %v792_v11, %s1647_s28 }
 0xaaf   :  { %v795_v12 = vpop.permute.xlu1 %794 }
 0xab0   :  { %v797_v13 = vadd.f32 %v795_v12, %v776_v45  ;;  %v1534_v45 = vpop.f32.mrb[19].mxu1 }
 0xab2   :  { %1616 = vtanh.f32 %v797_v13 }
 0xabc   :  { %v1617_v14 = vpop.eup %1616 }
 0xabd   :  { %801 = vrot.lane.b32.xlu0 %v1617_v14, %s1653_s23 }
 0xac1   :  { %1253 = vrot.lane.b32.xlu0 %v1252_v19, %s1653_s23 }
 0xac5   :  { %1278 = vrot.lane.b32.xlu0 %v1277_v21, %s1653_s23 }
 0xb04   :  { %v1034_v26 = vpop.f32.mrb[28].mxu0 }
 0xb05   :  { %v1035_v27 = vadd.f32 %v1354_v23, %v1034_v26  ;;  %v1527_v28 = vpop.f32.mrb[29].mxu0 }
 0xb06   :  { %v1037_v25 = vpop.f32.mrb[30].mxu0 }
 0xb07   :  { %v1044_v29 = vmax.f32 %v1035_v27, 0.0  ;;  %v1038_v30 = vadd.f32 %v1354_v23, %v1037_v25  ;;  %v1528_v31 = vpop.f32.mrb[31].mxu0 }
 0xb09   :  { %v1046_v32 = vsel %vm1043_vm7, %v1044_v29, %v1035_v27  ;;  %v1045_v33 = vmax.f32 %v1038_v30, 0.0 }
 0xb0a   :  { %1048 = vst [vmem:[%s1922_s4] sm:$0xff] %v1046_v32 }
 0xb0b   :  { %v1047_v34 = vsel %vm1043_vm7, %v1045_v33, %v1038_v30 }
 0xb0c   :  { %1049 = vst [vmem:[%s1922_s4 + $0x8] sm:$0xff] %v1047_v34 }
 0xb2f   :  { %v802_v35 = vpop.permute.xlu0 %801 }
 0xb30   :  { %v804_v36 = vmul.f32 %v802_v35, %v799_v46 }
 0xb32   :  { %v1050_v37 = vpack.c.bf16 %v804_v36, %v804_v36  ;;  %v1289_v41 = vrot.slane %v804_v36, %v1758_v55  ;;  %v1592_v55 = vld [vmem:[#allocation2 + $0x108] sm:$0xff]  }
 0xb33   :  { %v1254_v38 = vpop.permute.xlu0 %1253  ;;  %1544 = vmatpush3.bf16.msra.mxu0 %v1592_v55 }
 0xb34   :  { %1257 = vst.msk [vmem:[%s1923_s5] sm:$0x3] %vm1256_vm8, %v1254_v38  ;;  %1110 = vrot.lane.b32.xlu1 %v1050_v37, %s1653_s23  ;;  %1545 = vmatprep.subr.bf16.mxu0 %v1649_v0  ;;  %v1366_v0 = vld [vmem:[%s1921_s3 + $0xd] ss:$0 sm:$0xff] }
 0xb37   :  { %v1279_v40 = vpop.permute.xlu0 %1278  ;;  %1546 = vmatpush3.bf16.msra.mxu0 %v1593_v49 }
 0xb38   :  { %1281 = vst.msk [vmem:[%s1923_s5 + $0x4] sm:$0x3] %vm1256_vm8, %v1279_v40  ;;  %1266 = vrot.lane.b32.xlu1 %v1265_v39, %s1653_s23 }
 0xb3c   :  { %1290 = vrot.lane.b32.xlu1 %v1289_v41, %s1653_s23 }
 0xba6   :  { %v1111_v47 = vpop.permute.xlu1 %1110 }
 0xba7   :  { %1540 = vmatmul.mubr.msk.bf16.vlgmr.msra.gmra.mrb[20].mxu1 %vm61_vm1, %v1111_v47 }
 0xbaa   :  { %v1267_v59 = vpop.permute.xlu1 %1266 }
 0xbab   :  { %1269 = vst.msk [vmem:[%s1923_s5 + $0x2] sm:$0x3] %vm1256_vm8, %v1267_v59 }
 0xbae   :  { %v1291_v48 = vpop.permute.xlu1 %1290 }
 0xbaf   :  { %1293 = vst.msk [vmem:[%s1923_s5 + $0x6] sm:$0x3] %vm1256_vm8, %v1291_v48 }
 0xc7a   :  { %v1161_v50 = vpop.f32.mrb[20].mxu1 }
 0xc7b   :  { %v1162_v52 = vadd.f32 %v1161_v50, %v1103_v42  ;;  %v1541_v54 = vpop.f32.mrb[21].mxu1 }
 0xc7c   :  { %v1164_v56 = vpop.f32.mrb[22].mxu1 }
 0xc7d   :  { %v1172_v57 = vadd.f32 %v1365_v51, %v1162_v52  ;;  %v1542_v58 = vpop.f32.mrb[23].mxu1 }
 0xc7f   :  { %v1173_v60 = vmax.f32 %v1172_v57, 0.0 }
 0xc81   :  { %v1174_v61 = vpack.c.bf16 %v1173_v60, %v1173_v60 }
 0xc83   :  { %1548 = vmatmul.mubr.msk.bf16.vlgmr.msra.gmra.mrb[32].mxu0 %vm61_vm1, %v1174_v61 }
 0xd56   :  { %v1233_v62 = vpop.f32.mrb[32].mxu0 }
 0xd57   :  { %v1234_v63 = vadd.f32 %v1366_v0, %v1233_v62  ;;  %v1549_v1 = vpop.f32.mrb[33].mxu0 }
 0xd58   :  { %v1236_v2 = vpop.f32.mrb[34].mxu0 }
 0xd59   :  { %v1370_v3 = vmul.f32 -1.442695, %v1234_v63  ;;  %v1550_v4 = vpop.f32.mrb[35].mxu0 }
 0xd5b   :  { %1618 = vpow2.f32 %v1370_v3 }
 0xd65   :  { %v1619_v5 = vpop.eup %1618 }
 0xd66   :  { %v1242_v6 = vadd.f32 1.0, %v1619_v5 }
 0xd68   :  { %1620 = vrcp.f32 %v1242_v6 }
 0xd72   :  { %v1621_v7 = vpop.eup %1620 }
 0xd73   :  { %1294 = vst [vmem:[%s1923_s5 + $0x8] sm:$0x3] %v1621_v7 }
 0xd74   :  { %1303 = vsyncpa [#allocation3], 1 }

</bundles_post_ra>
